<compile_context>
chip_gen: v6e
topology: v6e:2x2x1
jax: 0.10.0
libtpu: 0.0.40
codegen_flags: <defaults>
</compile_context>

<pallas_src>
import functools

import jax
import jax.numpy as jnp
from jax.experimental import pallas as pl
from jax.experimental.pallas import tpu as pltpu


def _mlp_kernel(x_ref, w1_ref, b1_ref, w2_ref, b2_ref, w3t_ref, b3_ref, o_ref):
    # x arrives f32; cast to bf16 in-kernel (avoids a wrapper-side XLA pass over x).
    xb = x_ref[...].astype(jnp.bfloat16)

    # Layer 1: Linear(in_dim, 512) + LeakyReLU(0.2). bf16 MXU operands, f32 accum.
    h1 = jnp.dot(xb, w1_ref[...], preferred_element_type=jnp.float32) + b1_ref[...]
    h1 = jnp.maximum(h1, 0.2 * h1)

    # Layer 2: Linear(512, 256) + LeakyReLU(0.2).
    h2 = jnp.dot(h1.astype(jnp.bfloat16), w2_ref[...],
                 preferred_element_type=jnp.float32) + b2_ref[...]
    h2 = jnp.maximum(h2, 0.2 * h2)

    # Layer 3: Linear(256, 1). Contract the feature axis of BOTH operands
    # (w3t is (1, 256)) so the result is produced lane-dense as (1, tb) — batch on
    # lanes — with no (tb,1)->(1,tb) relayout and no 128-wide zero padding.
    o = jax.lax.dot_general(
        w3t_ref[...], h2.astype(jnp.bfloat16),
        dimension_numbers=(((1,), (1,)), ((), ())),
        preferred_element_type=jnp.float32)          # (1, tb)
    o_ref[...] = o + b3_ref[...]                     # b3 is (1, 1), broadcasts


def _round_up(a, m):
    return (a + m - 1) // m * m


def _auto_tb(B, K):
    """Batch tile: multiple of 256, derived from a ~40 MiB VMEM working-set budget."""
    per_row = 2 * 4 * K + 2 * K + 8192          # x dbl-buf f32 + in-kernel bf16 copy + temps
    w_bytes = (K * 512 + 512 * 256 + 256) * 2   # single-buffered bf16 weights
    budget = 40 * 1024 * 1024
    tb = max(256, ((budget - w_bytes) // per_row) // 256 * 256)
    tb = min(tb, 1024)
    tb = min(tb, max(256, _round_up(B, 256)))
    return int(tb)


def _vmem_limit_bytes(tb, K):
    w_vmem = (K * 512 + 512 * 256 + 256) * 2 + (512 + 256 + 1) * 4   # Buffered(1)
    x_vmem = 2 * tb * K * 4                                          # double-buffered f32 tile
    inter = tb * (K * 2 + 512 * 4 + 512 * 2 + 256 * 4 + 256 * 2 + 4)
    out_vmem = 2 * tb * 4
    est = w_vmem + x_vmem + inter + out_vmem
    return int(min(60 * 1024 * 1024, max(32 * 1024 * 1024, est + 12 * 1024 * 1024)))


@functools.partial(jax.jit, static_argnames=("tb",))
def dcgan_discriminator_forward(x, params, *, tb=None):
    """Fused DCGAN discriminator forward. x: (B, in_dim) f32 -> (B,) f32."""
    w1, b1, w2, b2, w3, b3 = params
    B, in_dim = x.shape
    H1 = w1.shape[1]
    H2 = w2.shape[1]

    # Batch tile selection (multiple of 128 mandatory for lane-dense output blocks;
    # auto path uses multiples of 256 to keep the 256-wide MXU rows full).
    if tb is None:
        tb = _auto_tb(B, in_dim)
    else:
        tb = max(128, _round_up(int(tb), 128))

    b_pad = (-B) % tb
    if b_pad:
        x = jnp.pad(x, ((0, b_pad), (0, 0)))
    Bp = B + b_pad
    n_tiles = Bp // tb

    # Weights cast to bf16 once in the wrapper (small vs x traffic); biases stay f32.
    w1b = w1.astype(jnp.bfloat16)
    w2b = w2.astype(jnp.bfloat16)
    w3t = w3.T.astype(jnp.bfloat16)            # (1, H2)
    b3s = b3.reshape(1, 1).astype(jnp.float32)

    def const(shape):  # grid-invariant, single-buffered
        return pl.BlockSpec(shape, lambda i: (0, 0), pipeline_mode=pl.Buffered(1))

    flops = 2 * Bp * (in_dim * H1 + H1 * H2 + H2 * 1)
    bytes_accessed = (Bp * in_dim * 4                       # x read (f32)
                      + (in_dim * H1 + H1 * H2 + H2) * 2    # bf16 weights
                      + (H1 + H2 + 1) * 4                   # biases
                      + Bp * 4)                             # packed logits write

    out = pl.pallas_call(
        _mlp_kernel,
        out_shape=jax.ShapeDtypeStruct((1, Bp), jnp.float32),
        grid_spec=pltpu.PrefetchScalarGridSpec(
            num_scalar_prefetch=0,
            grid=(n_tiles,),
            in_specs=[
                pl.BlockSpec((tb, in_dim), lambda i: (i, 0)),  # x tile walks batch
                const((in_dim, H1)),   # w1  (resident, single-buffered)
                const((1, H1)),        # b1
                const((H1, H2)),       # w2
                const((1, H2)),        # b2
                const((1, H2)),        # w3^T
                const((1, 1)),         # b3
            ],
            out_specs=pl.BlockSpec((1, tb), lambda i: (0, i)),  # lane-dense logits
        ),
        compiler_params=pltpu.CompilerParams(
            dimension_semantics=("parallel",),                 # v7x: 2 TCs split tiles
            vmem_limit_bytes=_vmem_limit_bytes(tb, in_dim),
        ),
        cost_estimate=pl.CostEstimate(flops=int(flops), transcendentals=0,
                                      bytes_accessed=int(bytes_accessed)),
    )(x, w1b, b1, w2b, b2, w3t, b3s)

    # Row 0 holds the packed logits; drop batch padding -> (B,), matches .view(-1).
    return out[0, :B]


def init_params(key, in_dim):
    """Deterministic init mimicking PyTorch nn.Linear default U(-1/sqrt(fan_in), +)."""
    dims = [(in_dim, 512), (512, 256), (256, 1)]
    params = []
    for i, (fi, fo) in enumerate(dims):
        kw, kb = jax.random.split(jax.random.fold_in(key, i))
        bound = 1.0 / jnp.sqrt(jnp.float32(fi))
        w = jax.random.uniform(kw, (fi, fo), jnp.float32, -bound, bound)
        b = jax.random.uniform(kb, (1, fo), jnp.float32, -bound, bound)
        params += [w, b]
    return tuple(params)


def _reference_forward_f32(x, params):
    w1, b1, w2, b2, w3, b3 = params
    h1 = x @ w1 + b1
    h1 = jnp.where(h1 > 0, h1, 0.2 * h1)
    h2 = h1 @ w2 + b2
    h2 = jnp.where(h2 > 0, h2, 0.2 * h2)
    return (h2 @ w3 + b3).reshape(-1)


def _reference_forward_bf16(x, params):
    """Reference with the same bf16-operand / f32-accumulate precision as the kernel."""
    w1, b1, w2, b2, w3, b3 = params
    bf = jnp.bfloat16
    h1 = jnp.dot(x.astype(bf), w1.astype(bf), preferred_element_type=jnp.float32) + b1
    h1 = jnp.where(h1 > 0, h1, 0.2 * h1)
    h2 = jnp.dot(h1.astype(bf), w2.astype(bf), preferred_element_type=jnp.float32) + b2
    h2 = jnp.where(h2 > 0, h2, 0.2 * h2)
    o = jnp.dot(h2.astype(bf), w3.astype(bf), preferred_element_type=jnp.float32) + b3
    return o.reshape(-1)


if __name__ == "__main__":
    key = jax.random.PRNGKey(0)
    # B not a tile multiple (exercises batch padding), in_dim not a multiple of 128
    # (exercises full-extent K blocks / unaligned contraction).
    B, in_dim = 300, 96

    kx, kp = jax.random.split(key)
    x = jax.random.normal(kx, (B, in_dim), jnp.float32)
    params = init_params(kp, in_dim)

    # Explicit tb=128 -> grid=(3,): multi-tile pipeline with resident single-buffered weights.
    out = dcgan_discriminator_forward(x, params, tb=128)
    out = jax.block_until_ready(out)
    assert out.shape == (B,)

    # Auto-tuned tile path (single larger tile here).
    out_auto = jax.block_until_ready(dcgan_discriminator_forward(x, params))
    assert out_auto.shape == (B,)

    ref_bf16 = _reference_forward_bf16(x, params)
    ref_f32 = _reference_forward_f32(x, params)
    assert jnp.allclose(out, ref_bf16, atol=5e-3, rtol=5e-3), "mismatch vs bf16 reference"
    assert jnp.allclose(out, ref_f32, atol=5e-2, rtol=5e-2), "mismatch vs f32 reference"
    assert jnp.allclose(out_auto, out, atol=1e-4, rtol=1e-4), "tile-size dependence"

    print("KERNEL_OK")
</pallas_src>

<mosaic_0001>
module attributes {stable_mosaic.version = 11 : i64} {
  func.func @_mlp_kernel(%arg0: i32, %arg1: memref<128x96xf32, #tpu.memory_space<vmem>>, %arg2: memref<96x512xbf16, #tpu.memory_space<vmem>>, %arg3: memref<1x512xf32, #tpu.memory_space<vmem>>, %arg4: memref<512x256xbf16, #tpu.memory_space<vmem>>, %arg5: memref<1x256xf32, #tpu.memory_space<vmem>>, %arg6: memref<1x256xbf16, #tpu.memory_space<vmem>>, %arg7: memref<1x1xf32, #tpu.memory_space<vmem>>, %arg8: memref<1x128xf32, #tpu.memory_space<vmem>>) attributes {dimension_semantics = [#tpu.dimension_semantics<parallel>], iteration_bounds = array<i64: 3>, scalar_prefetch = 0 : i64, scratch_operands = 0 : i64, tpu.core_type = #tpu.core_type<tc>, window_params = [{transform_indices = @transform_0, window_bounds = array<i64: 128, 96>}, {pipeline_mode = #tpu.pipeline_mode<synchronous>, transform_indices = @transform_1, window_bounds = array<i64: 96, 512>}, {pipeline_mode = #tpu.pipeline_mode<synchronous>, transform_indices = @transform_2, window_bounds = array<i64: 1, 512>}, {pipeline_mode = #tpu.pipeline_mode<synchronous>, transform_indices = @transform_3, window_bounds = array<i64: 512, 256>}, {pipeline_mode = #tpu.pipeline_mode<synchronous>, transform_indices = @transform_4, window_bounds = array<i64: 1, 256>}, {pipeline_mode = #tpu.pipeline_mode<synchronous>, transform_indices = @transform_5, window_bounds = array<i64: 1, 256>}, {pipeline_mode = #tpu.pipeline_mode<synchronous>, transform_indices = @transform_6, window_bounds = array<i64: 1, 1>}, {transform_indices = @transform_7, window_bounds = array<i64: 1, 128>}]} {
    %c0 = arith.constant 0 : index
    %c0_0 = arith.constant 0 : index
    %0 = vector.load %arg1[%c0, %c0_0] : memref<128x96xf32, #tpu.memory_space<vmem>>, vector<128x96xf32>
    %1 = arith.truncf %0 : vector<128x96xf32> to vector<128x96xbf16>
    %c0_1 = arith.constant 0 : index
    %c0_2 = arith.constant 0 : index
    %2 = vector.load %arg2[%c0_1, %c0_2] : memref<96x512xbf16, #tpu.memory_space<vmem>>, vector<96x512xbf16>
    %cst = arith.constant dense<0.000000e+00> : vector<128x512xf32>
    %3 = tpu.matmul %1, %2, %cst {dimension_numbers = #tpu.dot_dimension_numbers<[1], [0], [0], [1], [0, 0, 1, 1], [], []>} : vector<128x96xbf16>, vector<96x512xbf16>, vector<128x512xf32> -> vector<128x512xf32>
    %c0_3 = arith.constant 0 : index
    %c0_4 = arith.constant 0 : index
    %4 = vector.load %arg3[%c0_3, %c0_4] : memref<1x512xf32, #tpu.memory_space<vmem>>, vector<1x512xf32>
    %5 = vector.broadcast %4 : vector<1x512xf32> to vector<128x512xf32>
    %6 = arith.addf %3, %5 : vector<128x512xf32>
    %cst_5 = arith.constant 2.000000e-01 : f32
    %7 = vector.broadcast %cst_5 : f32 to vector<128x512xf32>
    %8 = arith.mulf %7, %6 : vector<128x512xf32>
    %9 = arith.maximumf %6, %8 : vector<128x512xf32>
    %10 = arith.truncf %9 : vector<128x512xf32> to vector<128x512xbf16>
    %c0_6 = arith.constant 0 : index
    %c0_7 = arith.constant 0 : index
    %11 = vector.load %arg4[%c0_6, %c0_7] : memref<512x256xbf16, #tpu.memory_space<vmem>>, vector<512x256xbf16>
    %cst_8 = arith.constant dense<0.000000e+00> : vector<128x256xf32>
    %12 = tpu.matmul %10, %11, %cst_8 {dimension_numbers = #tpu.dot_dimension_numbers<[1], [0], [0], [1], [0, 0, 1, 1], [], []>} : vector<128x512xbf16>, vector<512x256xbf16>, vector<128x256xf32> -> vector<128x256xf32>
    %c0_9 = arith.constant 0 : index
    %c0_10 = arith.constant 0 : index
    %13 = vector.load %arg5[%c0_9, %c0_10] : memref<1x256xf32, #tpu.memory_space<vmem>>, vector<1x256xf32>
    %14 = vector.broadcast %13 : vector<1x256xf32> to vector<128x256xf32>
    %15 = arith.addf %12, %14 : vector<128x256xf32>
    %cst_11 = arith.constant 2.000000e-01 : f32
    %16 = vector.broadcast %cst_11 : f32 to vector<128x256xf32>
    %17 = arith.mulf %16, %15 : vector<128x256xf32>
    %18 = arith.maximumf %15, %17 : vector<128x256xf32>
    %c0_12 = arith.constant 0 : index
    %c0_13 = arith.constant 0 : index
    %19 = vector.load %arg6[%c0_12, %c0_13] : memref<1x256xbf16, #tpu.memory_space<vmem>>, vector<1x256xbf16>
    %20 = arith.truncf %18 : vector<128x256xf32> to vector<128x256xbf16>
    %cst_14 = arith.constant dense<0.000000e+00> : vector<1x128xf32>
    %21 = tpu.matmul %19, %20, %cst_14 {dimension_numbers = #tpu.dot_dimension_numbers<[1], [1], [0], [0], [0, 0, 1, 0], [], []>} : vector<1x256xbf16>, vector<128x256xbf16>, vector<1x128xf32> -> vector<1x128xf32>
    %c0_15 = arith.constant 0 : index
    %c0_16 = arith.constant 0 : index
    %22 = vector.load %arg7[%c0_15, %c0_16] : memref<1x1xf32, #tpu.memory_space<vmem>>, vector<1x1xf32>
    %23 = vector.broadcast %22 : vector<1x1xf32> to vector<1x128xf32>
    %24 = arith.addf %21, %23 : vector<1x128xf32>
    %c0_17 = arith.constant 0 : index
    %c0_18 = arith.constant 0 : index
    %25 = vector.load %arg8[%c0_17, %c0_18] : memref<1x128xf32, #tpu.memory_space<vmem>>, vector<1x128xf32>
    tpu.vector_store %arg8[%c0_17, %c0_18], %24 {strides = array<i32>} : memref<1x128xf32, #tpu.memory_space<vmem>>, vector<1x128xf32>,
    return
  }
  func.func @transform_0(%arg0: i32) -> (i32, i32) {
    %c0_i32 = arith.constant 0 : i32
    %c0_i32_0 = arith.constant 0 : i32
    return %arg0, %c0_i32 : i32, i32
  }
  func.func @transform_1(%arg0: i32) -> (i32, i32) {
    %c0_i32 = arith.constant 0 : i32
    %c0_i32_0 = arith.constant 0 : i32
    %c0_i32_1 = arith.constant 0 : i32
    return %c0_i32, %c0_i32_0 : i32, i32
  }
  func.func @transform_2(%arg0: i32) -> (i32, i32) {
    %c0_i32 = arith.constant 0 : i32
    %c0_i32_0 = arith.constant 0 : i32
    %c0_i32_1 = arith.constant 0 : i32
    return %c0_i32, %c0_i32_0 : i32, i32
  }
  func.func @transform_3(%arg0: i32) -> (i32, i32) {
    %c0_i32 = arith.constant 0 : i32
    %c0_i32_0 = arith.constant 0 : i32
    %c0_i32_1 = arith.constant 0 : i32
    return %c0_i32, %c0_i32_0 : i32, i32
  }
  func.func @transform_4(%arg0: i32) -> (i32, i32) {
    %c0_i32 = arith.constant 0 : i32
    %c0_i32_0 = arith.constant 0 : i32
    %c0_i32_1 = arith.constant 0 : i32
    return %c0_i32, %c0_i32_0 : i32, i32
  }
  func.func @transform_5(%arg0: i32) -> (i32, i32) {
    %c0_i32 = arith.constant 0 : i32
    %c0_i32_0 = arith.constant 0 : i32
    %c0_i32_1 = arith.constant 0 : i32
    return %c0_i32, %c0_i32_0 : i32, i32
  }
  func.func @transform_6(%arg0: i32) -> (i32, i32) {
    %c0_i32 = arith.constant 0 : i32
    %c0_i32_0 = arith.constant 0 : i32
    %c0_i32_1 = arith.constant 0 : i32
    return %c0_i32, %c0_i32_0 : i32, i32
  }
  func.func @transform_7(%arg0: i32) -> (i32, i32) {
    %c0_i32 = arith.constant 0 : i32
    %c0_i32_0 = arith.constant 0 : i32
    return %c0_i32, %arg0 : i32, i32
  }
}

</mosaic_0001>

<bundles_post_ra>
// kernel: dcgan_discriminator_forward.1
= control target key start
LH: loop header
LB: loop body
LE: loop exit
PB: predicated region body
PF: predicated region fallthrough
CT: control target
= control target key end

     0   :  { %s2017_s26 = smov 0   ;;  %s2582_s0 = inlined_call_operand.vmem [shape: f32[384,96], index: 0, kind: input, shape index: {}]   ;;  %s2583_s1 = inlined_call_operand.vmem [shape: bf16[96,512], index: 1, kind: input, shape index: {}]   ;;  %s2584_s2 = inlined_call_operand.vmem [shape: f32[1,512], index: 2, kind: input, shape index: {}]   ;;  %s2585_s3 = inlined_call_operand.vmem [shape: bf16[512,256], index: 3, kind: input, shape index: {}]   ;;  %s2586_s4 = inlined_call_operand.vmem [shape: f32[1,256], index: 4, kind: input, shape index: {}]   ;;  %s2587_s5 = inlined_call_operand.vmem [shape: bf16[1,256], index: 5, kind: input, shape index: {}]   ;;  %s2588_s6 = inlined_call_operand.<no memory space> [shape: f32[1,1], index: 6, kind: input, shape index: {}]   ;;  %s2589_s7 = inlined_call_operand.vmem [shape: f32[1,384], index: 7, kind: output, shape index: {}]  }
   0x1   :  { %v12_v0 = vstv %s2588_s6 }
   0x2   :  { %13 = vst [vmem:[#allocation2] sm:$0x1] %v12_v0 }
   0x3 LB: > { %s2023_s27 = sadd.s32 4294967295, %s1970_s26   ;;  %p1711_p0 = scmp.ge.s32.totalorder %s1970_s26, 1  ;;  %s1970_s26 = sphi %s2017_s26, %s19_s26  }
   0x4   : > { %p240_p1 = scmp.lt.s32.totalorder %s1970_s26, 4 }
   0x6   : > { %p241_p2 = pnand %p1711_p0, %p240_p1 }
   0x8   : > { %244 = sbr.rel (%p241_p2) target bundleno = 775 (0x307), region = 48 }
   0xd   : > { %v1832_v1 = vld [vmem:[%s2583_s1 + $0xa4] ss:$16 sps:$4 sm:$0xff]   ;;  %v1834_v2 = vld [vmem:[%s2583_s1 + $0xac] ss:$16 sps:$4 sm:$0xff]   ;;  %v1972_v3 = vmov 0   ;;  %s1712_s14 = sshll.u32 %s2023_s27, 4 }
   0xe   : > { %527 = vmatprep.mubr.bf16.mxu0 %v1972_v3  ;;  %640 = vmatprep.mubr.bf16.mxu1 %v1972_v3  ;;  %v1836_v4 = vld [vmem:[%s2583_s1 + $0xa0] ss:$16 sps:$4 sm:$0xff]   ;;  %v1837_v5 = vld [vmem:[%s2583_s1 + $0xa8] ss:$16 sps:$4 sm:$0xff]   ;;  %v1838_v6 = vld [vmem:[%s2583_s1 + $0x84] ss:$16 sps:$4 sm:$0xff]  }
   0xf   : > { %499 = vmatprep.subr.bf16.mxu0 %v1832_v1  ;;  %1831 = vset.pattern.permute.xlu0 %v1972_v3  ;;  %v1840_v7 = vld [vmem:[%s2583_s1 + $0x8c] ss:$16 sps:$4 sm:$0xff]   ;;  %v1842_v8 = vld [vmem:[%s2583_s1 + $0x80] ss:$16 sps:$4 sm:$0xff]   ;;  %v1843_v9 = vld [vmem:[%s2583_s1 + $0x88] ss:$16 sps:$4 sm:$0xff]  }
  0x10   : > { %612 = vmatprep.subr.bf16.mxu1 %v1834_v2  ;;  %500 = vmatpush1.bf16.msra.mxu0 %v1836_v4  ;;  %v1844_v10 = vld [vmem:[%s2583_s1 + $0x64] ss:$16 sps:$4 sm:$0xff]   ;;  %p271_p3 = scmp.lt.s32.totalorder %s1712_s14, 47  ;;  %v1846_v11 = vld [vmem:[%s2583_s1 + $0x6c] ss:$16 sps:$4 sm:$0xff]   ;;  %vm470_vm0 = vcmask 785408  }
  0x11   : > { %613 = vmatpush1.bf16.msra.mxu1 %v1837_v5  ;;  %501 = vmatprep.subr.bf16.mxu0 %v1838_v6  ;;  %v1848_v12 = vld [vmem:[%s2583_s1 + $0x60] ss:$16 sps:$4 sm:$0xff]   ;;  %v1849_v13 = vld [vmem:[%s2583_s1 + $0x68] ss:$16 sps:$4 sm:$0xff]   ;;  %v1850_v14 = vld [vmem:[%s2583_s1 + $0x44] ss:$16 sps:$4 sm:$0xff]  }
  0x12   : > { %614 = vmatprep.subr.bf16.mxu1 %v1840_v7  ;;  %v1852_v15 = vld [vmem:[%s2583_s1 + $0x4c] ss:$16 sps:$4 sm:$0xff]   ;;  %s2595_s14 = smov (!%p271_p3, %s1712_s14), 47  ;;  %v1854_v16 = vld [vmem:[%s2583_s1 + $0x40] ss:$16 sps:$4 sm:$0xff]   ;;  %p276_p4 = scmp.lt.s32.totalorder %s2023_s27, 2 }
  0x13   : > { %v1855_v17 = vld [vmem:[%s2583_s1 + $0x48] ss:$16 sps:$4 sm:$0xff]   ;;  %v1856_v18 = vld [vmem:[%s2583_s1 + $0x24] ss:$16 sps:$4 sm:$0xff]   ;;  %v1858_v19 = vld [vmem:[%s2583_s1 + $0x2c] ss:$16 sps:$4 sm:$0xff]  }
  0x14   : > { %502 = vmatpush1.bf16.msra.mxu0 %v1842_v8  ;;  %s1713_s20 = sshll.u32 %s2595_s14, 3  ;;  %v1860_v20 = vld [vmem:[%s2583_s1 + $0x20] ss:$16 sps:$4 sm:$0xff]   ;;  %v1861_v21 = vld [vmem:[%s2583_s1 + $0x28] ss:$16 sps:$4 sm:$0xff]   ;;  %s2597_s27 = smov (!%p276_p4, %s2023_s27), 2 }
  0x15   : > { %615 = vmatpush1.bf16.msra.mxu1 %v1843_v9  ;;  %503 = vmatprep.subr.bf16.mxu0 %v1844_v10  ;;  %v1862_v22 = vld [vmem:[%s2583_s1 + $0x4] ss:$16 sps:$4 sm:$0xff]   ;;  %v1864_v23 = vld [vmem:[%s2583_s1 + $0xc] ss:$16 sps:$4 sm:$0xff]   ;;  %s2100_s8 = scalar_lea.vmem %s2582_s0, %s1713_s20  ;;  %v1866_v24 = vld [vmem:[%s2583_s1] ss:$16 sps:$4 sm:$0xff]   ;;  %s278_s22 = scalar_lea.vmem %s2589_s7, %s2597_s27 }
  0x16   : > { %616 = vmatprep.subr.bf16.mxu1 %v1846_v11  ;;  %v1867_v25 = vld [vmem:[%s2583_s1 + $0x8] ss:$16 sps:$4 sm:$0xff]   ;;  %v280_v26 = vld [vmem:[%s2100_s8] sm:$0xff]  ;;  %v1870_v28 = vld [vmem:[%s2585_s3 + $0x74] ss:$8 sps:$4 sm:$0xff]  }
  0x17   : > { %v281_v27 = vld [vmem:[%s2100_s8 + $0x8] sm:$0xff]  ;;  %v1873_v30 = vld [vmem:[%s2585_s3 + $0x174] ss:$8 sps:$4 sm:$0xff]   ;;  %v1868_v31 = vld [vmem:[%s2585_s3 + $0x70] ss:$8 sps:$4 sm:$0xff]  }
  0x18   : > { %504 = vmatpush1.bf16.msra.mxu0 %v1848_v12  ;;  %v296_v29 = vpack.c.bf16 %v281_v27, %v280_v26  ;;  %v1871_v32 = vld [vmem:[%s2585_s3 + $0x170] ss:$8 sps:$4 sm:$0xff]   ;;  %v1876_v33 = vld [vmem:[%s2585_s3 + $0x64] ss:$8 sps:$4 sm:$0xff]   ;;  %v1874_v37 = vld [vmem:[%s2585_s3 + $0x60] ss:$8 sps:$4 sm:$0xff]  }
  0x19   : > { %617 = vmatpush1.bf16.msra.mxu1 %v1849_v13  ;;  %505 = vmatprep.subr.bf16.mxu0 %v1850_v14  ;;  %v1879_v34 = vld [vmem:[%s2585_s3 + $0x164] ss:$8 sps:$4 sm:$0xff]   ;;  %v282_v35 = vld [vmem:[%s2100_s8 + $0x10] sm:$0xff]  ;;  %v283_v36 = vld [vmem:[%s2100_s8 + $0x18] sm:$0xff] }
  0x1a   : > { %618 = vmatprep.subr.bf16.mxu1 %v1852_v15  ;;  %v1877_v38 = vld [vmem:[%s2585_s3 + $0x160] ss:$8 sps:$4 sm:$0xff]   ;;  %v1882_v39 = vld [vmem:[%s2585_s3 + $0x54] ss:$8 sps:$4 sm:$0xff]   ;;  %v297_v41 = vpack.c.bf16 %v283_v36, %v282_v35  ;;  %v1880_v42 = vld [vmem:[%s2585_s3 + $0x50] ss:$8 sps:$4 sm:$0xff]  }
  0x1b   : > { %v1885_v40 = vld [vmem:[%s2585_s3 + $0x154] ss:$8 sps:$4 sm:$0xff]   ;;  %v1883_v43 = vld [vmem:[%s2585_s3 + $0x150] ss:$8 sps:$4 sm:$0xff]   ;;  %v1888_v44 = vld [vmem:[%s2585_s3 + $0x44] ss:$8 sps:$4 sm:$0xff]  }
  0x1c   : > { %506 = vmatpush1.bf16.msra.mxu0 %v1854_v16  ;;  %v1891_v45 = vld [vmem:[%s2585_s3 + $0x144] ss:$8 sps:$4 sm:$0xff]   ;;  %v1886_v48 = vld [vmem:[%s2585_s3 + $0x40] ss:$8 sps:$4 sm:$0xff]   ;;  %v1894_v50 = vld [vmem:[%s2585_s3 + $0x34] ss:$8 sps:$4 sm:$0xff]  }
  0x1d   : > { %619 = vmatpush1.bf16.msra.mxu1 %v1855_v17  ;;  %507 = vmatprep.subr.bf16.mxu0 %v1856_v18  ;;  %v284_v46 = vld [vmem:[%s2100_s8 + $0x20] sm:$0xff]  ;;  %v285_v47 = vld [vmem:[%s2100_s8 + $0x28] sm:$0xff]  ;;  %v1897_v51 = vld [vmem:[%s2585_s3 + $0x134] ss:$8 sps:$4 sm:$0xff]  }
  0x1e   : > { %620 = vmatprep.subr.bf16.mxu1 %v1858_v19  ;;  %v1889_v49 = vld [vmem:[%s2585_s3 + $0x140] ss:$8 sps:$4 sm:$0xff]   ;;  %v298_v52 = vpack.c.bf16 %v285_v47, %v284_v46  ;;  %v1892_v53 = vld [vmem:[%s2585_s3 + $0x30] ss:$8 sps:$4 sm:$0xff]   ;;  %v1900_v55 = vld [vmem:[%s2585_s3 + $0x24] ss:$8 sps:$4 sm:$0xff]  }
  0x1f   : > { %v1895_v54 = vld [vmem:[%s2585_s3 + $0x130] ss:$8 sps:$4 sm:$0xff]   ;;  %v1903_v56 = vld [vmem:[%s2585_s3 + $0x124] ss:$8 sps:$4 sm:$0xff]   ;;  %v1898_v59 = vld [vmem:[%s2585_s3 + $0x20] ss:$8 sps:$4 sm:$0xff]  }
  0x20   : > { %508 = vmatpush1.bf16.msra.mxu0 %v1860_v20  ;;  %v286_v57 = vld [vmem:[%s2100_s8 + $0x30] sm:$0xff]  ;;  %v287_v58 = vld [vmem:[%s2100_s8 + $0x38] sm:$0xff]  ;;  %v1901_v60 = vld [vmem:[%s2585_s3 + $0x120] ss:$8 sps:$4 sm:$0xff]  }
  0x21   : > { %621 = vmatpush1.bf16.msra.mxu1 %v1861_v21  ;;  %509 = vmatprep.subr.bf16.mxu0 %v1862_v22  ;;  %v1906_v61 = vld [vmem:[%s2585_s3 + $0x14] ss:$8 sps:$4 sm:$0xff]   ;;  %v299_v63 = vpack.c.bf16 %v287_v58, %v286_v57  ;;  %v1904_v0 = vld [vmem:[%s2585_s3 + $0x10] ss:$8 sps:$4 sm:$0xff]   ;;  %v288_v2 = vld [vmem:[%s2100_s8 + $0x40] sm:$0xff] }
  0x22   : > { %622 = vmatprep.subr.bf16.mxu1 %v1864_v23  ;;  %v1909_v62 = vld [vmem:[%s2585_s3 + $0x114] ss:$8 sps:$4 sm:$0xff]   ;;  %v1907_v1 = vld [vmem:[%s2585_s3 + $0x110] ss:$8 sps:$4 sm:$0xff]   ;;  %v1912_v4 = vld [vmem:[%s2585_s3 + $0x4] ss:$8 sps:$4 sm:$0xff]  }
  0x23   : > { %v1915_v5 = vld [vmem:[%s2585_s3 + $0x104] ss:$8 sps:$4 sm:$0xff]   ;;  %v1910_v7 = vld [vmem:[%s2585_s3] ss:$8 sps:$4 sm:$0xff]   ;;  %v1918_v9 = vld [vmem:[%s2585_s3 + $0xf4] ss:$8 sps:$4 sm:$0xff]  }
  0x24   : > { %510 = vmatpush1.bf16.msra.mxu0 %v1866_v24  ;;  %v289_v6 = vld [vmem:[%s2100_s8 + $0x48] sm:$0xff]  ;;  %v1921_v10 = vld [vmem:[%s2585_s3 + $0x1f4] ss:$8 sps:$4 sm:$0xff]   ;;  %v1916_v12 = vld [vmem:[%s2585_s3 + $0xf0] ss:$8 sps:$4 sm:$0xff]  }
  0x25   : > { %623 = vmatpush1.bf16.msra.mxu1 %v1867_v25  ;;  %1277 = vmatprep.subr.bf16.mxu0 %v1870_v28  ;;  %v1913_v8 = vld [vmem:[%s2585_s3 + $0x100] ss:$8 sps:$4 sm:$0xff]   ;;  %v300_v11 = vpack.c.bf16 %v289_v6, %v288_v2  ;;  %v1919_v13 = vld [vmem:[%s2585_s3 + $0x1f0] ss:$8 sps:$4 sm:$0xff]   ;;  %v1924_v14 = vld [vmem:[%s2585_s3 + $0xe4] ss:$8 sps:$4 sm:$0xff]  }
  0x26   : > { %1390 = vmatprep.subr.bf16.mxu1 %v1873_v30  ;;  %v1927_v15 = vld [vmem:[%s2585_s3 + $0x1e4] ss:$8 sps:$4 sm:$0xff]   ;;  %v290_v16 = vld [vmem:[%s2100_s8 + $0x50] sm:$0xff]  ;;  %v291_v17 = vld [vmem:[%s2100_s8 + $0x58] sm:$0xff] }
  0x27   : > { %1738 = vmatmul.mubr.msk.bf16.vlgmr.msra.gmra.mxu0 %vm470_vm0, %v296_v29  ;;  %v1922_v18 = vld [vmem:[%s2585_s3 + $0xe0] ss:$8 sps:$4 sm:$0xff]   ;;  %v1930_v20 = vld [vmem:[%s2585_s3 + $0xd4] ss:$8 sps:$4 sm:$0xff]   ;;  %v301_v22 = vpack.c.bf16 %v291_v17, %v290_v16  ;;  %v1928_v23 = vld [vmem:[%s2585_s3 + $0xd0] ss:$8 sps:$4 sm:$0xff]  }
  0x28   : > { %1746 = vmatmul.mubr.msk.bf16.vlgmr.msra.gmra.mxu1 %vm470_vm0, %v296_v29  ;;  %537 = vmatprep.mubr.bf16.mxu0 %v1972_v3  ;;  %v1925_v19 = vld [vmem:[%s2585_s3 + $0x1e0] ss:$8 sps:$4 sm:$0xff]   ;;  %v1933_v21 = vld [vmem:[%s2585_s3 + $0x1d4] ss:$8 sps:$4 sm:$0xff]   ;;  %v1931_v24 = vld [vmem:[%s2585_s3 + $0x1d0] ss:$8 sps:$4 sm:$0xff]  }
  0x29   : > { %650 = vmatprep.mubr.bf16.mxu1 %v1972_v3  ;;  %1278 = vmatpush1.bf16.msra.mxu0 %v1868_v31  ;;  %v1936_v25 = vld [vmem:[%s2585_s3 + $0xc4] ss:$8 sps:$4 sm:$0xff]   ;;  %v1934_v29 = vld [vmem:[%s2585_s3 + $0xc0] ss:$8 sps:$4 sm:$0xff]   ;;  %v1942_v35 = vld [vmem:[%s2585_s3 + $0xb4] ss:$8 sps:$4 sm:$0xff]  }
  0x2a   : > { %1391 = vmatpush1.bf16.msra.mxu1 %v1871_v32  ;;  %1279 = vmatprep.subr.bf16.mxu0 %v1876_v33  ;;  %v1939_v26 = vld [vmem:[%s2585_s3 + $0x1c4] ss:$8 sps:$4 sm:$0xff]   ;;  %v1937_v30 = vld [vmem:[%s2585_s3 + $0x1c0] ss:$8 sps:$4 sm:$0xff]   ;;  %v294_v32 = vld [vmem:[%s2100_s8 + $0x70] sm:$0xff] }
  0x2b   : > { %1392 = vmatprep.subr.bf16.mxu1 %v1879_v34  ;;  %v292_v27 = vld [vmem:[%s2100_s8 + $0x60] sm:$0xff]  ;;  %v293_v28 = vld [vmem:[%s2100_s8 + $0x68] sm:$0xff]  ;;  %v295_v33 = vld [vmem:[%s2100_s8 + $0x78] sm:$0xff] }
  0x2c   : > { %v302_v31 = vpack.c.bf16 %v293_v28, %v292_v27  ;;  %v303_v34 = vpack.c.bf16 %v295_v33, %v294_v32  ;;  %v1945_v36 = vld [vmem:[%s2585_s3 + $0x1b4] ss:$8 sps:$4 sm:$0xff]   ;;  %v1960_v46 = vld [vmem:[%s2585_s3 + $0x84] ss:$8 sps:$4 sm:$0xff]  }
  0x2d   : > { %1280 = vmatpush1.bf16.msra.mxu0 %v1874_v37  ;;  %v1940_v37 = vld [vmem:[%s2585_s3 + $0xb0] ss:$8 sps:$4 sm:$0xff]   ;;  %v1963_v47 = vld [vmem:[%s2585_s3 + $0x184] ss:$8 sps:$4 sm:$0xff]  }
  0x2e   : > { %1393 = vmatpush1.bf16.msra.mxu1 %v1877_v38  ;;  %1281 = vmatprep.subr.bf16.mxu0 %v1882_v39  ;;  %v1948_v38 = vld [vmem:[%s2585_s3 + $0xa4] ss:$8 sps:$4 sm:$0xff]  }
  0x2f   : > { %1394 = vmatprep.subr.bf16.mxu1 %v1885_v40  ;;  %1739 = vmatmul.mubr.msk.bf16.gmra.mxu0 %vm470_vm0, %v297_v41  ;;  %v1951_v39 = vld [vmem:[%s2585_s3 + $0x1a4] ss:$8 sps:$4 sm:$0xff]   ;;  %v1946_v40 = vld [vmem:[%s2585_s3 + $0xa0] ss:$8 sps:$4 sm:$0xff]  }
  0x30   : > { %1747 = vmatmul.mubr.msk.bf16.gmra.mxu1 %vm470_vm0, %v297_v41  ;;  %547 = vmatprep.mubr.bf16.mxu0 %v1972_v3  ;;  %v1949_v41 = vld [vmem:[%s2585_s3 + $0x1a0] ss:$8 sps:$4 sm:$0xff]  }
  0x31   : > { %660 = vmatprep.mubr.bf16.mxu1 %v1972_v3  ;;  %1282 = vmatpush1.bf16.msra.mxu0 %v1880_v42  ;;  %v1954_v42 = vld [vmem:[%s2585_s3 + $0x94] ss:$8 sps:$4 sm:$0xff]  }
  0x32   : > { %1395 = vmatpush1.bf16.msra.mxu1 %v1883_v43  ;;  %1283 = vmatprep.subr.bf16.mxu0 %v1888_v44  ;;  %v1957_v43 = vld [vmem:[%s2585_s3 + $0x194] ss:$8 sps:$4 sm:$0xff]   ;;  %v1952_v44 = vld [vmem:[%s2585_s3 + $0x90] ss:$8 sps:$4 sm:$0xff]  }
  0x33   : > { %1396 = vmatprep.subr.bf16.mxu1 %v1891_v45  ;;  %v1955_v45 = vld [vmem:[%s2585_s3 + $0x190] ss:$8 sps:$4 sm:$0xff]  }
  0x35   : > { %1284 = vmatpush1.bf16.msra.mxu0 %v1886_v48  ;;  %v1958_v48 = vld [vmem:[%s2585_s3 + $0x80] ss:$8 sps:$4 sm:$0xff]  }
  0x36   : > { %1397 = vmatpush1.bf16.msra.mxu1 %v1889_v49  ;;  %1285 = vmatprep.subr.bf16.mxu0 %v1894_v50  ;;  %v1961_v49 = vld [vmem:[%s2585_s3 + $0x180] ss:$8 sps:$4 sm:$0xff]   ;;  %v330_v50 = vlaneseq }
  0x37   : > { %1398 = vmatprep.subr.bf16.mxu1 %v1897_v51  ;;  %1740 = vmatmul.mubr.msk.bf16.gmra.mxu0 %vm470_vm0, %v298_v52 }
  0x38   : > { %1748 = vmatmul.mubr.msk.bf16.gmra.mxu1 %vm470_vm0, %v298_v52  ;;  %557 = vmatprep.mubr.bf16.mxu0 %v1972_v3  ;;  %v2346_v51 = vshrl.u32 %v330_v50, 7 }
  0x39   : > { %670 = vmatprep.mubr.bf16.mxu1 %v1972_v3  ;;  %1286 = vmatpush1.bf16.msra.mxu0 %v1892_v53 }
  0x3a   : > { %1399 = vmatpush1.bf16.msra.mxu1 %v1895_v54  ;;  %1287 = vmatprep.subr.bf16.mxu0 %v1900_v55  ;;  %v2349_v52 = vsub.s32 0, %v2346_v51  ;;  %v336_v53 = vsub.s32 1, %v2346_v51  ;;  %v328_v54 = vld [vmem:[%s2584_s2] sm:$0xf]  ;;  %v344_v55 = vsub.s32 3, %v2346_v51 }
  0x3b   : > { %1400 = vmatprep.subr.bf16.mxu1 %v1903_v56  ;;  %v340_v56 = vsub.s32 2, %v2346_v51 }
  0x3c   : > { %2591 = vst [vmem:[#allocation3_spill] sm:$0xff] %v2349_v52  ;;  %v2358_v57 = vrot.slane %v328_v54, %v2349_v52  ;;  %v2362_v58 = vrot.slane %v328_v54, %v336_v53 }
  0x3d   : > { %1288 = vmatpush1.bf16.msra.mxu0 %v1898_v59 }
  0x3e   : > { %1401 = vmatpush1.bf16.msra.mxu1 %v1901_v60  ;;  %1289 = vmatprep.subr.bf16.mxu0 %v1906_v61  ;;  %v2364_v61 = vrot.slane %v328_v54, %v344_v55 }
  0x3f   : > { %1402 = vmatprep.subr.bf16.mxu1 %v1909_v62  ;;  %1741 = vmatmul.mubr.msk.bf16.gmra.mxu0 %vm470_vm0, %v299_v63  ;;  %v2366_v62 = vrot.slane %v328_v54, %v340_v56 }
  0x40   : > { %1749 = vmatmul.mubr.msk.bf16.gmra.mxu1 %vm470_vm0, %v299_v63  ;;  %567 = vmatprep.mubr.bf16.mxu0 %v1972_v3 }
  0x41   : > { %680 = vmatprep.mubr.bf16.mxu1 %v1972_v3  ;;  %1290 = vmatpush1.bf16.msra.mxu0 %v1904_v0 }
  0x42   : > { %1403 = vmatpush1.bf16.msra.mxu1 %v1907_v1  ;;  %1291 = vmatprep.subr.bf16.mxu0 %v1912_v4 }
  0x43   : > { %1404 = vmatprep.subr.bf16.mxu1 %v1915_v5 }
  0x45   : > { %1292 = vmatpush1.bf16.msra.mxu0 %v1910_v7 }
  0x46   : > { %1405 = vmatpush1.bf16.msra.mxu1 %v1913_v8  ;;  %1293 = vmatprep.subr.bf16.mxu0 %v1918_v9 }
  0x47   : > { %1406 = vmatprep.subr.bf16.mxu1 %v1921_v10  ;;  %1742 = vmatmul.mubr.msk.bf16.gmra.mxu0 %vm470_vm0, %v300_v11 }
  0x48   : > { %1750 = vmatmul.mubr.msk.bf16.gmra.mxu1 %vm470_vm0, %v300_v11  ;;  %577 = vmatprep.mubr.bf16.mxu0 %v1972_v3 }
  0x49   : > { %690 = vmatprep.mubr.bf16.mxu1 %v1972_v3  ;;  %1294 = vmatpush2.bf16.msra.mxu0 %v1916_v12 }
  0x4a   : > { %1407 = vmatpush2.bf16.msra.mxu1 %v1919_v13  ;;  %1295 = vmatprep.subr.bf16.mxu0 %v1924_v14 }
  0x4b   : > { %1408 = vmatprep.subr.bf16.mxu1 %v1927_v15 }
  0x4d   : > { %1296 = vmatpush2.bf16.msra.mxu0 %v1922_v18 }
  0x4e   : > { %1409 = vmatpush2.bf16.msra.mxu1 %v1925_v19  ;;  %1297 = vmatprep.subr.bf16.mxu0 %v1930_v20 }
  0x4f   : > { %1410 = vmatprep.subr.bf16.mxu1 %v1933_v21  ;;  %1743 = vmatmul.mubr.msk.bf16.gmra.mxu0 %vm470_vm0, %v301_v22 }
  0x50   : > { %1751 = vmatmul.mubr.msk.bf16.gmra.mxu1 %vm470_vm0, %v301_v22  ;;  %587 = vmatprep.mubr.bf16.mxu0 %v1972_v3 }
  0x51   : > { %700 = vmatprep.mubr.bf16.mxu1 %v1972_v3  ;;  %1298 = vmatpush2.bf16.msra.mxu0 %v1928_v23 }
  0x52   : > { %1411 = vmatpush2.bf16.msra.mxu1 %v1931_v24  ;;  %1299 = vmatprep.subr.bf16.mxu0 %v1936_v25 }
  0x53   : > { %1412 = vmatprep.subr.bf16.mxu1 %v1939_v26 }
  0x55   : > { %1300 = vmatpush2.bf16.msra.mxu0 %v1934_v29 }
  0x56   : > { %1413 = vmatpush2.bf16.msra.mxu1 %v1937_v30  ;;  %1301 = vmatprep.subr.bf16.mxu0 %v1942_v35 }
  0x57   : > { %1744 = vmatmul.mubr.msk.bf16.gmra.mxu0 %vm470_vm0, %v302_v31  ;;  %1414 = vmatprep.subr.bf16.mxu1 %v1945_v36 }
  0x58   : > { %1752 = vmatmul.mubr.msk.bf16.gmra.mxu1 %vm470_vm0, %v302_v31  ;;  %597 = vmatprep.mubr.bf16.mxu0 %v1972_v3 }
  0x59   : > { %710 = vmatprep.mubr.bf16.mxu1 %v1972_v3  ;;  %v1943_v3 = vld [vmem:[%s2585_s3 + $0x1b0] ss:$8 sps:$4 sm:$0xff]   ;;  %1302 = vmatpush2.bf16.msra.mxu0 %v1940_v37 }
  0x5a   : > { %1415 = vmatpush2.bf16.msra.mxu1 %v1943_v3  ;;  %1303 = vmatprep.subr.bf16.mxu0 %v1948_v38 }
  0x5b   : > { %1416 = vmatprep.subr.bf16.mxu1 %v1951_v39 }
  0x5d   : > { %1304 = vmatpush2.bf16.msra.mxu0 %v1946_v40 }
  0x5e   : > { %1417 = vmatpush2.bf16.msra.mxu1 %v1949_v41  ;;  %1305 = vmatprep.subr.bf16.mxu0 %v1954_v42 }
  0x5f   : > { %1745 = vmatmul.mubr.msk.bf16.gmra.mxu0 %vm470_vm0, %v303_v34  ;;  %1418 = vmatprep.subr.bf16.mxu1 %v1957_v43 }
  0x60   : > { %1753 = vmatmul.mubr.msk.bf16.gmra.mxu1 %vm470_vm0, %v303_v34 }
  0x61   : > { %1306 = vmatpush2.bf16.msra.mxu0 %v1952_v44 }
  0x62   : > { %1419 = vmatpush2.bf16.msra.mxu1 %v1955_v45  ;;  %1307 = vmatprep.subr.bf16.mxu0 %v1960_v46 }
  0x63   : > { %1420 = vmatprep.subr.bf16.mxu1 %v1963_v47 }
  0x65   : > { %1308 = vmatpush2.bf16.msra.mxu0 %v1958_v48 }
  0x66   : > { %1421 = vmatpush2.bf16.msra.mxu1 %v1961_v49 }
  0xe7   : > { %v529_v59 = vpop.f32.mrf.mxu0 }
  0xe8   : > { %v642_v60 = vpop.f32.mrf.mxu1  ;;  %v530_v1 = vadd.f32 %v529_v59, %v2358_v57 }
  0xe9   : > { %v531_v63 = vpop.f32.mrf.mxu0  ;;  %v643_v7 = vadd.f32 %v642_v60, %v2366_v62 }
  0xea   : > { %v644_v0 = vpop.f32.mrf.mxu1  ;;  %v532_v2 = vadd.f32 %v531_v63, %v2362_v58  ;;  %v721_v12 = vmul.f32 0.2, %v530_v1 }
  0xeb   : > { %v645_v4 = vadd.f32 %v644_v0, %v2364_v61  ;;  %v533_v5 = vpop.f32.mrf.mxu0  ;;  %v723_v21 = vmul.f32 0.2, %v643_v7 }
  0xec   : > { %v646_v6 = vpop.f32.mrf.mxu1  ;;  %v534_v8 = vadd.f32 %v533_v5, %v2358_v57  ;;  %v722_v13 = vmul.f32 0.2, %v532_v2  ;;  %v785_v28 = vmax.f32 %v530_v1, %v721_v12 }
  0xed   : > { %v647_v9 = vadd.f32 %v646_v6, %v2366_v62  ;;  %v535_v10 = vpop.f32.mrf.mxu0  ;;  %v724_v16 = vmul.f32 0.2, %v645_v4  ;;  %v787_v3 = vmax.f32 %v643_v7, %v723_v21 }
  0xee   : > { %v648_v11 = vpop.f32.mrf.mxu1  ;;  %v536_v14 = vadd.f32 %v535_v10, %v2362_v58  ;;  %v725_v17 = vmul.f32 0.2, %v534_v8  ;;  %v786_v32 = vmax.f32 %v532_v2, %v722_v13 }
  0xef   : > { %v649_v15 = vadd.f32 %v648_v11, %v2364_v61  ;;  %v727_v18 = vmul.f32 0.2, %v647_v9  ;;  %v539_v19 = vpop.f32.mrf.mxu0  ;;  %v788_v33 = vmax.f32 %v645_v4, %v724_v16 }
  0xf0   : > { %v652_v20 = vpop.f32.mrf.mxu1  ;;  %v726_v22 = vmul.f32 0.2, %v536_v14  ;;  %v789_v24 = vmax.f32 %v534_v8, %v725_v17  ;;  %v2377_v25 = vadd.f32 %v539_v19, %v2358_v57 }
  0xf1   : > { %v728_v23 = vmul.f32 0.2, %v649_v15  ;;  %v541_v26 = vpop.f32.mrf.mxu0  ;;  %v791_v29 = vmax.f32 %v647_v9, %v727_v18  ;;  %v653_v38 = vadd.f32 %v652_v20, %v2366_v62 }
  0xf2   : > { %v654_v27 = vpop.f32.mrf.mxu1  ;;  %v790_v30 = vmax.f32 %v536_v14, %v726_v22  ;;  %v542_v34 = vadd.f32 %v541_v26, %v2362_v58  ;;  %v849_v41 = vpack.c.bf16 %v789_v24, %v785_v28  ;;  %v729_v42 = vmul.f32 0.2, %v2377_v25 }
  0xf3   : > { %v792_v31 = vmax.f32 %v649_v15, %v728_v23  ;;  %v655_v35 = vadd.f32 %v654_v27, %v2364_v61  ;;  %v543_v36 = vpop.f32.mrf.mxu0  ;;  %v851_v47 = vpack.c.bf16 %v791_v29, %v787_v3  ;;  %v731_v1 = vmul.f32 0.2, %v653_v38 }
  0xf4   : > { %v656_v37 = vpop.f32.mrf.mxu1  ;;  %v544_v39 = vadd.f32 %v543_v36, %v2358_v57  ;;  %v850_v45 = vpack.c.bf16 %v790_v30, %v786_v32  ;;  %v730_v54 = vmul.f32 0.2, %v542_v34  ;;  %v793_v10 = vmax.f32 %v2377_v25, %v729_v42 }
  0xf5   : > { %v657_v40 = vadd.f32 %v656_v37, %v2366_v62  ;;  %v545_v43 = vpop.f32.mrf.mxu0  ;;  %v852_v46 = vpack.c.bf16 %v792_v31, %v788_v33  ;;  %v732_v55 = vmul.f32 0.2, %v655_v35  ;;  %v795_v20 = vmax.f32 %v653_v38, %v731_v1 }
  0xf6   : > { %v658_v44 = vpop.f32.mrf.mxu1  ;;  %v733_v48 = vmul.f32 0.2, %v544_v39  ;;  %v546_v49 = vadd.f32 %v545_v43, %v2362_v58  ;;  %1309 = vmatprep.mubr.bf16.mxu0 %v850_v45  ;;  %v794_v11 = vmax.f32 %v542_v34, %v730_v54 }
  0xf7   : > { %v659_v50 = vadd.f32 %v658_v44, %v2364_v61  ;;  %v735_v56 = vmul.f32 0.2, %v657_v40  ;;  %1422 = vmatprep.mubr.bf16.mxu1 %v852_v46  ;;  %v549_v59 = vpop.f32.mrf.mxu0  ;;  %1310 = vmatmul.mubr.bf16.vlgmr.msra.gmra.mxu0 %v849_v41  ;;  %v796_v12 = vmax.f32 %v655_v35, %v732_v55 }
  0xf8   : > { %v662_v60 = vpop.f32.mrf.mxu1  ;;  %v734_v63 = vmul.f32 0.2, %v546_v49  ;;  %1423 = vmatmul.mubr.bf16.vlgmr.msra.gmra.mxu1 %v851_v47  ;;  %v797_v2 = vmax.f32 %v544_v39, %v733_v48  ;;  %v550_v16 = vadd.f32 %v549_v59, %v2358_v57 }
  0xf9   : > { %v736_v0 = vmul.f32 0.2, %v659_v50  ;;  %v551_v4 = vpop.f32.mrf.mxu0  ;;  %v799_v13 = vmax.f32 %v657_v40, %v735_v56  ;;  %v663_v17 = vadd.f32 %v662_v60, %v2366_v62 }
  0xfa   : > { %v664_v5 = vpop.f32.mrf.mxu1  ;;  %v798_v6 = vmax.f32 %v546_v49, %v734_v63  ;;  %v552_v8 = vadd.f32 %v551_v4, %v2362_v58  ;;  %v853_v28 = vpack.c.bf16 %v797_v2, %v793_v10  ;;  %v737_v35 = vmul.f32 0.2, %v550_v16 }
  0xfb   : > { %v800_v7 = vmax.f32 %v659_v50, %v736_v0  ;;  %v665_v9 = vadd.f32 %v664_v5, %v2364_v61  ;;  %v553_v14 = vpop.f32.mrf.mxu0  ;;  %v855_v34 = vpack.c.bf16 %v799_v13, %v795_v20  ;;  %v739_v36 = vmul.f32 0.2, %v663_v17 }
  0xfc   : > { %v666_v15 = vpop.f32.mrf.mxu1  ;;  %v554_v18 = vadd.f32 %v553_v14, %v2358_v57  ;;  %v854_v23 = vpack.c.bf16 %v798_v6, %v794_v11  ;;  %v738_v26 = vmul.f32 0.2, %v552_v8  ;;  %v801_v54 = vmax.f32 %v550_v16, %v737_v35 }
  0xfd   : > { %v667_v19 = vadd.f32 %v666_v15, %v2366_v62  ;;  %v555_v21 = vpop.f32.mrf.mxu0  ;;  %v856_v24 = vpack.c.bf16 %v800_v7, %v796_v12  ;;  %v740_v25 = vmul.f32 0.2, %v665_v9  ;;  %v803_v55 = vmax.f32 %v663_v17, %v739_v36 }
  0xfe   : > { %v668_v22 = vpop.f32.mrf.mxu1  ;;  %v741_v27 = vmul.f32 0.2, %v554_v18  ;;  %v556_v30 = vadd.f32 %v555_v21, %v2362_v58  ;;  %1319 = vmatprep.mubr.bf16.mxu0 %v854_v23  ;;  %v802_v41 = vmax.f32 %v552_v8, %v738_v26 }
  0xff   : > { %v743_v29 = vmul.f32 0.2, %v667_v19  ;;  %v669_v31 = vadd.f32 %v668_v22, %v2364_v61  ;;  %1432 = vmatprep.mubr.bf16.mxu1 %v856_v24  ;;  %v559_v32 = vpop.f32.mrf.mxu0  ;;  %1320 = vmatmul.mubr.bf16.gmra.mxu0 %v853_v28  ;;  %v804_v42 = vmax.f32 %v665_v9, %v740_v25 }
 0x100   : > { %v672_v33 = vpop.f32.mrf.mxu1  ;;  %v2397_v37 = vadd.f32 %v559_v32, %v2358_v57  ;;  %v742_v3 = vmul.f32 0.2, %v556_v30  ;;  %1433 = vmatmul.mubr.bf16.gmra.mxu1 %v855_v34  ;;  %v805_v43 = vmax.f32 %v554_v18, %v741_v27 }
 0x101   : > { %v744_v38 = vmul.f32 0.2, %v669_v31  ;;  %v561_v39 = vpop.f32.mrf.mxu0  ;;  %v807_v45 = vmax.f32 %v667_v19, %v743_v29  ;;  %v673_v59 = vadd.f32 %v672_v33, %v2366_v62 }
 0x102   : > { %v674_v40 = vpop.f32.mrf.mxu1  ;;  %v562_v44 = vadd.f32 %v561_v39, %v2362_v58  ;;  %v806_v46 = vmax.f32 %v556_v30, %v742_v3  ;;  %v745_v56 = vmul.f32 0.2, %v2397_v37  ;;  %v857_v8 = vpack.c.bf16 %v805_v43, %v801_v54 }
 0x103   : > { %v808_v47 = vmax.f32 %v669_v31, %v744_v38  ;;  %v675_v48 = vadd.f32 %v674_v40, %v2364_v61  ;;  %v563_v49 = vpop.f32.mrf.mxu0  ;;  %v859_v14 = vpack.c.bf16 %v807_v45, %v803_v55  ;;  %v747_v15 = vmul.f32 0.2, %v673_v59 }
 0x104   : > { %v676_v50 = vpop.f32.mrf.mxu1  ;;  %v564_v60 = vadd.f32 %v563_v49, %v2358_v57  ;;  %v858_v2 = vpack.c.bf16 %v806_v46, %v802_v41  ;;  %v746_v5 = vmul.f32 0.2, %v562_v44  ;;  %v809_v31 = vmax.f32 %v2397_v37, %v745_v56 }
 0x105   : > { %v677_v63 = vadd.f32 %v676_v50, %v2366_v62  ;;  %v565_v0 = vpop.f32.mrf.mxu0  ;;  %v860_v4 = vpack.c.bf16 %v808_v47, %v804_v42  ;;  %v748_v9 = vmul.f32 0.2, %v675_v48  ;;  %v811_v32 = vmax.f32 %v673_v59, %v747_v15 }
 0x106   : > { %v678_v1 = vpop.f32.mrf.mxu1  ;;  %v566_v6 = vadd.f32 %v565_v0, %v2362_v58  ;;  %v749_v10 = vmul.f32 0.2, %v564_v60  ;;  %1329 = vmatprep.mubr.bf16.mxu0 %v858_v2  ;;  %v810_v21 = vmax.f32 %v562_v44, %v746_v5 }
 0x107   : > { %v679_v7 = vadd.f32 %v678_v1, %v2364_v61  ;;  %v751_v11 = vmul.f32 0.2, %v677_v63  ;;  %1442 = vmatprep.mubr.bf16.mxu1 %v860_v4  ;;  %v569_v12 = vpop.f32.mrf.mxu0  ;;  %1330 = vmatmul.mubr.bf16.gmra.mxu0 %v857_v8  ;;  %v812_v26 = vmax.f32 %v675_v48, %v748_v9 }
 0x108   : > { %v682_v13 = vpop.f32.mrf.mxu1  ;;  %v750_v16 = vmul.f32 0.2, %v566_v6  ;;  %v2408_v18 = vadd.f32 %v569_v12, %v2358_v57  ;;  %1443 = vmatmul.mubr.bf16.gmra.mxu1 %v859_v14  ;;  %v813_v22 = vmax.f32 %v564_v60, %v749_v10 }
 0x109   : > { %v752_v17 = vmul.f32 0.2, %v679_v7  ;;  %v571_v19 = vpop.f32.mrf.mxu0  ;;  %v815_v25 = vmax.f32 %v677_v63, %v751_v11  ;;  %v683_v36 = vadd.f32 %v682_v13, %v2366_v62 }
 0x10a   : > { %v684_v20 = vpop.f32.mrf.mxu1  ;;  %v814_v23 = vmax.f32 %v566_v6, %v750_v16  ;;  %v572_v27 = vadd.f32 %v571_v19, %v2362_v58  ;;  %v753_v35 = vmul.f32 0.2, %v2408_v18  ;;  %v861_v44 = vpack.c.bf16 %v813_v22, %v809_v31 }
 0x10b   : > { %v816_v24 = vmax.f32 %v679_v7, %v752_v17  ;;  %v685_v28 = vadd.f32 %v684_v20, %v2364_v61  ;;  %v573_v29 = vpop.f32.mrf.mxu0  ;;  %v863_v49 = vpack.c.bf16 %v815_v25, %v811_v32  ;;  %v755_v55 = vmul.f32 0.2, %v683_v36 }
 0x10c   : > { %v686_v30 = vpop.f32.mrf.mxu1  ;;  %v574_v33 = vadd.f32 %v573_v29, %v2358_v57  ;;  %v862_v39 = vpack.c.bf16 %v814_v23, %v810_v21  ;;  %v754_v37 = vmul.f32 0.2, %v572_v27  ;;  %v817_v4 = vmax.f32 %v2408_v18, %v753_v35 }
 0x10d   : > { %v687_v34 = vadd.f32 %v686_v30, %v2366_v62  ;;  %v575_v3 = vpop.f32.mrf.mxu0  ;;  %v864_v40 = vpack.c.bf16 %v816_v24, %v812_v26  ;;  %v756_v45 = vmul.f32 0.2, %v685_v28  ;;  %v819_v14 = vmax.f32 %v683_v36, %v755_v55 }
 0x10e   : > { %v688_v38 = vpop.f32.mrf.mxu1  ;;  %v757_v41 = vmul.f32 0.2, %v574_v33  ;;  %v576_v42 = vadd.f32 %v575_v3, %v2362_v58  ;;  %1339 = vmatprep.mubr.bf16.mxu0 %v862_v39  ;;  %v818_v5 = vmax.f32 %v572_v27, %v754_v37 }
 0x10f   : > { %v689_v43 = vadd.f32 %v688_v38, %v2364_v61  ;;  %v759_v46 = vmul.f32 0.2, %v687_v34  ;;  %1452 = vmatprep.mubr.bf16.mxu1 %v864_v40  ;;  %v579_v47 = vpop.f32.mrf.mxu0  ;;  %1340 = vmatmul.mubr.bf16.gmra.mxu0 %v861_v44  ;;  %v820_v6 = vmax.f32 %v685_v28, %v756_v45 }
 0x110   : > { %v692_v48 = vpop.f32.mrf.mxu1  ;;  %v758_v50 = vmul.f32 0.2, %v576_v42  ;;  %v821_v56 = vmax.f32 %v574_v33, %v757_v41  ;;  %1453 = vmatmul.mubr.bf16.gmra.mxu1 %v863_v49  ;;  %v580_v10 = vadd.f32 %v579_v47, %v2358_v57 }
 0x111   : > { %v760_v54 = vmul.f32 0.2, %v689_v43  ;;  %v581_v59 = vpop.f32.mrf.mxu0  ;;  %v823_v7 = vmax.f32 %v687_v34, %v759_v46  ;;  %v693_v11 = vadd.f32 %v692_v48, %v2366_v62 }
 0x112   : > { %v694_v60 = vpop.f32.mrf.mxu1  ;;  %v822_v63 = vmax.f32 %v576_v42, %v758_v50  ;;  %v582_v1 = vadd.f32 %v581_v59, %v2362_v58  ;;  %v865_v22 = vpack.c.bf16 %v821_v56, %v817_v4  ;;  %v761_v29 = vmul.f32 0.2, %v580_v10 }
 0x113   : > { %v824_v0 = vmax.f32 %v689_v43, %v760_v54  ;;  %v695_v2 = vadd.f32 %v694_v60, %v2364_v61  ;;  %v583_v8 = vpop.f32.mrf.mxu0  ;;  %v867_v28 = vpack.c.bf16 %v823_v7, %v819_v14  ;;  %v763_v30 = vmul.f32 0.2, %v693_v11 }
 0x114   : > { %v696_v9 = vpop.f32.mrf.mxu1  ;;  %v584_v12 = vadd.f32 %v583_v8, %v2358_v57  ;;  %v866_v17 = vpack.c.bf16 %v822_v63, %v818_v5  ;;  %v762_v20 = vmul.f32 0.2, %v582_v1  ;;  %v825_v46 = vmax.f32 %v580_v10, %v761_v29 }
 0x115   : > { %v697_v13 = vadd.f32 %v696_v9, %v2366_v62  ;;  %v585_v15 = vpop.f32.mrf.mxu0  ;;  %v868_v19 = vpack.c.bf16 %v824_v0, %v820_v6  ;;  %v764_v18 = vmul.f32 0.2, %v695_v2  ;;  %v827_v47 = vmax.f32 %v693_v11, %v763_v30 }
 0x116   : > { %v698_v16 = vpop.f32.mrf.mxu1  ;;  %v765_v21 = vmul.f32 0.2, %v584_v12  ;;  %v586_v24 = vadd.f32 %v585_v15, %v2362_v58  ;;  %1349 = vmatprep.mubr.bf16.mxu0 %v866_v17  ;;  %v826_v3 = vmax.f32 %v582_v1, %v762_v20 }
 0x117   : > { %v767_v23 = vmul.f32 0.2, %v697_v13  ;;  %v699_v26 = vadd.f32 %v698_v16, %v2364_v61  ;;  %1462 = vmatprep.mubr.bf16.mxu1 %v868_v19  ;;  %v589_v25 = vpop.f32.mrf.mxu0  ;;  %1350 = vmatmul.mubr.bf16.gmra.mxu0 %v865_v22  ;;  %v828_v38 = vmax.f32 %v695_v2, %v764_v18 }
 0x118   : > { %v702_v27 = vpop.f32.mrf.mxu1  ;;  %v2429_v31 = vadd.f32 %v589_v25, %v2358_v57  ;;  %v766_v33 = vmul.f32 0.2, %v586_v24  ;;  %1463 = vmatmul.mubr.bf16.gmra.mxu1 %v867_v28  ;;  %v829_v39 = vmax.f32 %v584_v12, %v765_v21 }
 0x119   : > { %v2432_v32 = vadd.f32 %v702_v27, %v2366_v62  ;;  %v768_v34 = vmul.f32 0.2, %v699_v26  ;;  %v591_v35 = vpop.f32.mrf.mxu0  ;;  %v831_v41 = vmax.f32 %v697_v13, %v767_v23 }
 0x11a   : > { %v704_v36 = vpop.f32.mrf.mxu1  ;;  %v592_v40 = vadd.f32 %v591_v35, %v2362_v58  ;;  %v830_v42 = vmax.f32 %v586_v24, %v766_v33  ;;  %v769_v48 = vmul.f32 0.2, %v2429_v31  ;;  %v869_v2 = vpack.c.bf16 %v829_v39, %v825_v46 }
 0x11b   : > { %v832_v43 = vmax.f32 %v699_v26, %v768_v34  ;;  %v705_v44 = vadd.f32 %v704_v36, %v2364_v61  ;;  %v593_v37 = vpop.f32.mrf.mxu0  ;;  %v771_v49 = vmul.f32 0.2, %v2432_v32  ;;  %v871_v9 = vpack.c.bf16 %v831_v41, %v827_v47 }
 0x11c   : > { %v706_v45 = vpop.f32.mrf.mxu1  ;;  %v594_v50 = vadd.f32 %v593_v37, %v2358_v57  ;;  %v870_v59 = vpack.c.bf16 %v830_v42, %v826_v3  ;;  %v770_v63 = vmul.f32 0.2, %v592_v40  ;;  %v833_v12 = vmax.f32 %v2429_v31, %v769_v48 }
 0x11d   : > { %v707_v54 = vadd.f32 %v706_v45, %v2366_v62  ;;  %v595_v55 = vpop.f32.mrf.mxu0  ;;  %v872_v60 = vpack.c.bf16 %v832_v43, %v828_v38  ;;  %v772_v4 = vmul.f32 0.2, %v705_v44  ;;  %v835_v16 = vmax.f32 %v2432_v32, %v771_v49 }
 0x11e   : > { %v708_v56 = vpop.f32.mrf.mxu1  ;;  %v596_v0 = vadd.f32 %v595_v55, %v2362_v58  ;;  %v773_v5 = vmul.f32 0.2, %v594_v50  ;;  %1359 = vmatprep.mubr.bf16.mxu0 %v870_v59  ;;  %v834_v17 = vmax.f32 %v592_v40, %v770_v63 }
 0x11f   : > { %v709_v1 = vadd.f32 %v708_v56, %v2364_v61  ;;  %v775_v6 = vmul.f32 0.2, %v707_v54  ;;  %1472 = vmatprep.mubr.bf16.mxu1 %v872_v60  ;;  %v599_v7 = vpop.f32.mrf.mxu0  ;;  %1360 = vmatmul.mubr.bf16.gmra.mxu0 %v869_v2  ;;  %v836_v18 = vmax.f32 %v705_v44, %v772_v4  ;;  %v945_v56 = vld [vmem:[%s2586_s4] sm:$0x3]  ;;  %v1973_v2 = vmov 1966171168  }
 0x120   : > { %v712_v8 = vpop.f32.mrf.mxu1  ;;  %v774_v10 = vmul.f32 0.2, %v596_v0  ;;  %v837_v13 = vmax.f32 %v594_v50, %v773_v5  ;;  %1473 = vmatmul.mubr.bf16.gmra.mxu1 %v871_v9  ;;  %v600_v25 = vadd.f32 %v599_v7, %v2358_v57  ;;  %v2456_v59 = vrot.slane %v945_v56, %v2349_v52  ;;  %v2466_v7 = vld.sshfl [vmem:[%s2587_s5] sm:$0x11 pattern:$0x75316420] }
 0x121   : > { %v776_v11 = vmul.f32 0.2, %v709_v1  ;;  %v601_v14 = vpop.f32.mrf.mxu0  ;;  %v839_v21 = vmax.f32 %v707_v54, %v775_v6  ;;  %v713_v27 = vadd.f32 %v712_v8, %v2366_v62  ;;  %v2460_v60 = vrot.slane %v945_v56, %v336_v53 }
 0x122   : > { %v714_v15 = vpop.f32.mrf.mxu1  ;;  %v838_v19 = vmax.f32 %v596_v0, %v774_v10  ;;  %v602_v22 = vadd.f32 %v601_v14, %v2362_v58  ;;  %v873_v35 = vpack.c.bf16 %v837_v13, %v833_v12  ;;  %v777_v42 = vmul.f32 0.2, %v600_v25 }
 0x123   : > { %v840_v20 = vmax.f32 %v709_v1, %v776_v11  ;;  %v715_v23 = vadd.f32 %v714_v15, %v2364_v61  ;;  %v603_v24 = vpop.f32.mrf.mxu0  ;;  %v875_v41 = vpack.c.bf16 %v839_v21, %v835_v16  ;;  %v1604_v4 = vunpack.c.l.s4 %v1973_v2 }
 0x124   : > { %v716_v26 = vpop.f32.mrf.mxu1  ;;  %v604_v28 = vadd.f32 %v603_v24, %v2358_v57  ;;  %v778_v30 = vmul.f32 0.2, %v602_v22  ;;  %v874_v33 = vpack.c.bf16 %v838_v19, %v834_v17  ;;  %v841_v49 = vmax.f32 %v600_v25, %v777_v42 }
 0x125   : > { %v717_v29 = vadd.f32 %v716_v26, %v2366_v62  ;;  %v605_v31 = vpop.f32.mrf.mxu0  ;;  %v876_v34 = vpack.c.bf16 %v840_v20, %v836_v18  ;;  %v780_v36 = vmul.f32 0.2, %v715_v23  ;;  %v779_v62 = vmul.f32 0.2, %v713_v27 }
 0x126   : > { %v718_v32 = vpop.f32.mrf.mxu1  ;;  %v781_v3 = vmul.f32 0.2, %v604_v28  ;;  %v606_v38 = vadd.f32 %v605_v31, %v2362_v58  ;;  %1369 = vmatprep.mubr.bf16.mxu0 %v874_v33  ;;  %v842_v44 = vmax.f32 %v602_v22, %v778_v30  ;;  %v1605_v10 = vunpack.c.0.s8 %v1604_v4 }
 0x127   : > { %v719_v39 = vadd.f32 %v718_v32, %v2364_v61  ;;  %v783_v40 = vmul.f32 0.2, %v717_v29  ;;  %1482 = vmatprep.mubr.bf16.mxu1 %v876_v34  ;;  %1370 = vmatmul.mubr.bf16.gmra.mxu0 %v873_v35  ;;  %v844_v37 = vmax.f32 %v715_v23, %v780_v36  ;;  %v843_v61 = vmax.f32 %v713_v27, %v779_v62 }
 0x128   : > { %v782_v57 = vmul.f32 0.2, %v606_v38  ;;  %1483 = vmatmul.mubr.bf16.gmra.mxu1 %v875_v41  ;;  %v845_v45 = vmax.f32 %v604_v28, %v781_v3  ;;  %v1602_v12 = vcombine.high %v2466_v7, %v2466_v7  ;;  %v2473_v15 = vsub.s32 %v1605_v10, %v2346_v51  ;;  %v1584_v51 = vld [vmem:[#allocation2] sm:$0x1] }
 0x129   : > { %v784_v43 = vmul.f32 0.2, %v719_v39  ;;  %v847_v48 = vmax.f32 %v717_v29, %v783_v40  ;;  %1587 = vperm.xlu0 %1831, %v1584_v51  }
 0x12a   : > { %v846_v46 = vmax.f32 %v606_v38, %v782_v57  ;;  %v877_v54 = vpack.c.bf16 %v845_v45, %v841_v49  ;;  %v1616_v23 = vrot.slane %v1602_v12, %v2473_v15 }
 0x12b   : > { %v848_v47 = vmax.f32 %v719_v39, %v784_v43  ;;  %v879_v55 = vpack.c.bf16 %v847_v48, %v843_v61 }
 0x12c   : > { %v878_v58 = vpack.c.bf16 %v846_v46, %v842_v44 }
 0x12d   : > { %v880_v50 = vpack.c.bf16 %v848_v47, %v844_v37 }
 0x12e   : > { %1379 = vmatprep.mubr.bf16.mxu0 %v878_v58 }
 0x12f   : > { %1492 = vmatprep.mubr.bf16.mxu1 %v880_v50  ;;  %1380 = vmatmul.mubr.bf16.gmra.mxu0 %v877_v54 }
 0x130   : > { %1493 = vmatmul.mubr.bf16.gmra.mxu1 %v879_v55  ;;  %1651 = vmatprep.mubr.bf16.mxu0 %v1616_v23 }
 0x1b7   : > { %v1311_v63 = vpop.f32.mrf.mxu0 }
 0x1b8   : > { %v1424_v0 = vpop.f32.mrf.mxu1  ;;  %v1312_v1 = vadd.f32 %v1311_v63, %v2456_v59 }
 0x1b9   : > { %v1313_v5 = vpop.f32.mrf.mxu0 }
 0x1ba   : > { %v1426_v6 = vpop.f32.mrf.mxu1  ;;  %v1425_v8 = vadd.f32 %v1424_v0, %v1312_v1  ;;  %v1314_v9 = vadd.f32 %v1313_v5, %v2460_v60 }
 0x1bb   : > { %v1315_v11 = vpop.f32.mrf.mxu0 }
 0x1bc   : > { %v1428_v53 = vpop.f32.mrf.mxu1  ;;  %v1427_v13 = vadd.f32 %v1426_v6, %v1314_v9  ;;  %v1316_v14 = vadd.f32 %v1315_v11, %v2456_v59  ;;  %v1503_v16 = vmul.f32 0.2, %v1425_v8 }
 0x1bd   : > { %v1317_v17 = vpop.f32.mrf.mxu0 }
 0x1be   : > { %v1430_v19 = vpop.f32.mrf.mxu1  ;;  %v1429_v20 = vadd.f32 %v1428_v53, %v1316_v14  ;;  %v1318_v18 = vadd.f32 %v1317_v17, %v2460_v60  ;;  %v1504_v24 = vmul.f32 0.2, %v1427_v13  ;;  %v1535_v29 = vmax.f32 %v1425_v8, %v1503_v16 }
 0x1bf   : > { %v1321_v21 = vpop.f32.mrf.mxu0 }
 0x1c0   : > { %v1505_v26 = vmul.f32 0.2, %v1429_v20  ;;  %v1431_v25 = vadd.f32 %v1430_v19, %v1318_v18  ;;  %v1322_v27 = vadd.f32 %v1321_v21, %v2456_v59  ;;  %v1434_v28 = vpop.f32.mrf.mxu1  ;;  %v1536_v3 = vmax.f32 %v1427_v13, %v1504_v24 }
 0x1c1   : > { %v1323_v30 = vpop.f32.mrf.mxu0 }
 0x1c2   : > { %v1537_v31 = vmax.f32 %v1429_v20, %v1505_v26  ;;  %v1506_v32 = vmul.f32 0.2, %v1431_v25  ;;  %v1435_v33 = vadd.f32 %v1434_v28, %v1322_v27  ;;  %v1324_v34 = vadd.f32 %v1323_v30, %v2460_v60  ;;  %v1436_v35 = vpop.f32.mrf.mxu1 }
 0x1c3   : > { %v1325_v36 = vpop.f32.mrf.mxu0 }
 0x1c4   : > { %v2481_v38 = vpack.c.bf16 %v1537_v31, %v1535_v29  ;;  %v1538_v39 = vmax.f32 %v1431_v25, %v1506_v32  ;;  %v1437_v40 = vadd.f32 %v1436_v35, %v1324_v34  ;;  %v1438_v41 = vpop.f32.mrf.mxu1  ;;  %v1326_v42 = vadd.f32 %v1325_v36, %v2456_v59 }
 0x1c5   : > { %v1327_v57 = vpop.f32.mrf.mxu0  ;;  %v1507_v37 = vmul.f32 0.2, %v1435_v33 }
 0x1c6   : > { %v1328_v43 = vadd.f32 %v1327_v57, %v2460_v60  ;;  %v1440_v62 = vpop.f32.mrf.mxu1  ;;  %v2485_v44 = vpack.c.bf16 %v1538_v39, %v1536_v3  ;;  %v1439_v45 = vadd.f32 %v1438_v41, %v1326_v42  ;;  %v1508_v58 = vmul.f32 0.2, %v1437_v40 }
 0x1c7   : > { %v1331_v46 = vpop.f32.mrf.mxu0  ;;  %v1539_v0 = vmax.f32 %v1435_v33, %v1507_v37 }
 0x1c8   : > { %v1441_v47 = vadd.f32 %v1440_v62, %v1328_v43  ;;  %v1332_v48 = vadd.f32 %v1331_v46, %v2456_v59  ;;  %v1444_v49 = vpop.f32.mrf.mxu1  ;;  %v1509_v50 = vmul.f32 0.2, %v1439_v45  ;;  %v1540_v9 = vmax.f32 %v1437_v40, %v1508_v58 }
 0x1c9   : > { %v1333_v61 = vpop.f32.mrf.mxu0 }
 0x1ca   : > { %v1510_v54 = vmul.f32 0.2, %v1441_v47  ;;  %v1445_v55 = vadd.f32 %v1444_v49, %v1332_v48  ;;  %v1334_v56 = vadd.f32 %v1333_v61, %v2460_v60  ;;  %v1446_v63 = vpop.f32.mrf.mxu1  ;;  %v1541_v1 = vmax.f32 %v1439_v45, %v1509_v50 }
 0x1cb   : > { %v1335_v2 = vpop.f32.mrf.mxu0 }
 0x1cc   : > { %v1542_v4 = vmax.f32 %v1441_v47, %v1510_v54  ;;  %v1447_v5 = vadd.f32 %v1446_v63, %v1334_v56  ;;  %v1336_v6 = vadd.f32 %v1335_v2, %v2456_v59  ;;  %v1448_v8 = vpop.f32.mrf.mxu1  ;;  %v2490_v10 = vpack.c.bf16 %v1541_v1, %v1539_v0 }
 0x1cd   : > { %v1337_v11 = vpop.f32.mrf.mxu0  ;;  %v1511_v53 = vmul.f32 0.2, %v1445_v55 }
 0x1ce   : > { %v1449_v12 = vadd.f32 %v1448_v8, %v1336_v6  ;;  %v1338_v13 = vadd.f32 %v1337_v11, %v2460_v60  ;;  %v1450_v14 = vpop.f32.mrf.mxu1  ;;  %v2493_v17 = vpack.c.bf16 %v1542_v4, %v1540_v9  ;;  %v1512_v19 = vmul.f32 0.2, %v1447_v5 }
 0x1cf   : > { %v1341_v16 = vpop.f32.mrf.mxu0  ;;  %v1543_v26 = vmax.f32 %v1445_v55, %v1511_v53 }
 0x1d0   : > { %v1513_v20 = vmul.f32 0.2, %v1449_v12  ;;  %v1451_v18 = vadd.f32 %v1450_v14, %v1338_v13  ;;  %v1342_v21 = vadd.f32 %v1341_v16, %v2456_v59  ;;  %v1454_v23 = vpop.f32.mrf.mxu1  ;;  %v1544_v30 = vmax.f32 %v1447_v5, %v1512_v19 }
 0x1d1   : > { %v2496_v24 = vpop.f32.mrf.mxu0 }
 0x1d2   : > { %v1545_v25 = vmax.f32 %v1449_v12, %v1513_v20  ;;  %v1514_v27 = vmul.f32 0.2, %v1451_v18  ;;  %v1455_v28 = vadd.f32 %v1454_v23, %v1342_v21  ;;  %v2498_v51 = vpop.f32.mrf.mxu1 }
 0x1d3   : > { %v1345_v29 = vpop.f32.mrf.mxu0 }
 0x1d4   : > { %v2500_v31 = vpack.c.bf16 %v1545_v25, %v1543_v26  ;;  %v1546_v32 = vmax.f32 %v1451_v18, %v1514_v27  ;;  %v1458_v33 = vpop.f32.mrf.mxu1  ;;  %v1346_v34 = vadd.f32 %v1345_v29, %v2456_v59  ;;  %v1515_v39 = vmul.f32 0.2, %v1455_v28 }
 0x1d5   : > { %v2503_v35 = vpop.f32.mrf.mxu0 }
 0x1d6   : > { %v2505_v36 = vpop.f32.mrf.mxu1  ;;  %v2507_v3 = vpack.c.bf16 %v1546_v32, %v1544_v30  ;;  %v1459_v40 = vadd.f32 %v1458_v33, %v1346_v34  ;;  %v1547_v37 = vmax.f32 %v1455_v28, %v1515_v39 }
 0x1d7   : > { %v2509_v41 = vpop.f32.mrf.mxu0 }
 0x1d8   : > { %v2511_v42 = vpop.f32.mrf.mxu1  ;;  %v1517_v57 = vmul.f32 0.2, %v1459_v40 }
 0x1d9   : > { %v2513_v43 = vpop.f32.mrf.mxu0 }
 0x1da   : > { %v2515_v62 = vpop.f32.mrf.mxu1  ;;  %v1549_v45 = vmax.f32 %v1459_v40, %v1517_v57 }
 0x1db   : > { %v2517_v46 = vpop.f32.mrf.mxu0 }
 0x1dc   : > { %v2519_v47 = vpop.f32.mrf.mxu1  ;;  %v2521_v48 = vpack.c.bf16 %v1549_v45, %v1547_v37 }
 0x1dd   : > { %v1357_v49 = vpop.f32.mrf.mxu0 }
 0x1de   : > { %v2523_v58 = vpop.f32.mrf.mxu1  ;;  %v1358_v22 = vadd.f32 %v1357_v49, %v2460_v60 }
 0x1df   : > { %v2525_v50 = vpop.f32.mrf.mxu0 }
 0x1e0   : > { %v2527_v61 = vpop.f32.mrf.mxu1 }
 0x1e1   : > { %v1363_v54 = vpop.f32.mrf.mxu0 }
 0x1e2   : > { %v1476_v55 = vpop.f32.mrf.mxu1 }
 0x1e3   : > { %v1365_v56 = vpop.f32.mrf.mxu0 }
 0x1e4   : > { %v2529_v63 = vpop.f32.mrf.mxu1 }
 0x1e5   : > { %v1367_v0 = vpop.f32.mrf.mxu0 }
 0x1e6   : > { %v1480_v1 = vpop.f32.mrf.mxu1  ;;  %v1368_v57 = vadd.f32 %v1367_v0, %v2460_v60 }
 0x1e7   : > { %v1371_v2 = vpop.f32.mrf.mxu0 }
 0x1e8   : > { %v1484_v4 = vpop.f32.mrf.mxu1 }
 0x1e9   : > { %v1373_v5 = vpop.f32.mrf.mxu0 }
 0x1ea   : > { %v1486_v6 = vpop.f32.mrf.mxu1  ;;  %v1374_v20 = vadd.f32 %v1373_v5, %v2460_v60 }
 0x1eb   : > { %v1375_v8 = vpop.f32.mrf.mxu0 }
 0x1ec   : > { %v1488_v9 = vpop.f32.mrf.mxu1  ;;  %v1487_v32 = vadd.f32 %v1486_v6, %v1374_v20  ;;  %v1376_v34 = vadd.f32 %v1375_v8, %v2456_v59  ;;  %v1481_v20 = vadd.f32 %v1480_v1, %v1368_v57  ;;  %v1362_v1 = vadd.f32 %v2525_v50, %v2456_v59 }
 0x1ed   : > { %v1377_v11 = vpop.f32.mrf.mxu0  ;;  %v1356_v50 = vadd.f32 %v2517_v46, %v2456_v59 }
 0x1ee   : > { %v1490_v53 = vpop.f32.mrf.mxu1  ;;  %v1378_v13 = vadd.f32 %v1377_v11, %v2460_v60  ;;  %v1372_v11 = vadd.f32 %v1371_v2, %v2456_v59  ;;  %v1489_v6 = vadd.f32 %v1488_v9, %v1376_v34  ;;  %v1475_v49 = vadd.f32 %v2527_v61, %v1362_v1 }
 0x1ef   : > { %v1381_v12 = vpop.f32.mrf.mxu0  ;;  %v1344_v61 = vadd.f32 %v2496_v24, %v2460_v60 }
 0x1f0   : > { %v1494_v14 = vpop.f32.mrf.mxu1  ;;  %v1382_v16 = vadd.f32 %v1381_v12, %v2456_v59  ;;  %v1491_v26 = vadd.f32 %v1490_v53, %v1378_v13  ;;  %v1364_v13 = vadd.f32 %v1363_v54, %v2460_v60  ;;  %v1529_v2 = vmul.f32 0.2, %v1489_v6 }
 0x1f1   : > { %v1383_v19 = vpop.f32.mrf.mxu0  ;;  %v1526_v54 = vmul.f32 0.2, %v1481_v20 }
 0x1f2   : > { %v1384_v18 = vadd.f32 %v1383_v19, %v2460_v60  ;;  %v1496_v21 = vpop.f32.mrf.mxu1  ;;  %v1495_v28 = vadd.f32 %v1494_v14, %v1382_v16  ;;  %v1530_v37 = vmul.f32 0.2, %v1491_v26  ;;  %v1528_v14 = vmul.f32 0.2, %v1487_v32 }
 0x1f3   : > { %v1385_v23 = vpop.f32.mrf.mxu0  ;;  %v1477_v0 = vadd.f32 %v1476_v55, %v1364_v13 }
 0x1f4   : > { %v1497_v25 = vadd.f32 %v1496_v21, %v1384_v18  ;;  %v1498_v27 = vpop.f32.mrf.mxu1  ;;  %v1386_v29 = vadd.f32 %v1385_v23, %v2456_v59  ;;  %v1531_v53 = vmul.f32 0.2, %v1495_v28  ;;  %v1562_v18 = vmax.f32 %v1491_v26, %v1530_v37 }
 0x1f5   : > { %v1387_v30 = vpop.f32.mrf.mxu0  ;;  %v1485_v23 = vadd.f32 %v1484_v4, %v1372_v11  ;;  %v1354_v4 = vadd.f32 %v2513_v43, %v2460_v60  ;;  %v1524_v55 = vmul.f32 0.2, %v1477_v0 }
 0x1f6   : > { %v1388_v33 = vadd.f32 %v1387_v30, %v2460_v60  ;;  %v1499_v39 = vadd.f32 %v1498_v27, %v1386_v29  ;;  %v1500_v40 = vpop.f32.mrf.mxu1  ;;  %v1532_v45 = vmul.f32 0.2, %v1497_v25  ;;  %v1563_v27 = vmax.f32 %v1495_v28, %v1531_v53 }
 0x1f7   : > { %v1560_v29 = vmax.f32 %v1487_v32, %v1528_v14  ;;  %v1527_v9 = vmul.f32 0.2, %v1485_v23  ;;  %v1558_v28 = vmax.f32 %v1481_v20, %v1526_v54  ;;  %v1467_v34 = vadd.f32 %v2515_v62, %v1354_v4 }
 0x1f8   : > { %v1501_v5 = vadd.f32 %v1500_v40, %v1388_v33  ;;  %v1533_v12 = vmul.f32 0.2, %v1499_v39  ;;  %v1564_v8 = vmax.f32 %v1497_v25, %v1532_v45  ;;  %v1366_v33 = vadd.f32 %v1365_v56, %v2456_v59 }
 0x1f9   : > { %v1581_v52 = vpack.c.bf16 %v1562_v18, %v1560_v29  ;;  %v1561_v56 = vmax.f32 %v1489_v6, %v1529_v2  ;;  %v1471_v25 = vadd.f32 %v2523_v58, %v1358_v22  ;;  %v1559_v32 = vmax.f32 %v1485_v23, %v1527_v9  ;;  %v1588_v18 = vpop.permute.xlu0 %1587 }
 0x1fa   : > { %v1534_v16 = vmul.f32 0.2, %v1501_v5  ;;  %v1565_v19 = vmax.f32 %v1499_v39, %v1533_v12  ;;  %v1479_v26 = vadd.f32 %v2529_v63, %v1366_v33  ;;  %v1556_v39 = vmax.f32 %v1477_v0, %v1524_v55 }
 0x1fb   : > { %v1580_v37 = vpack.c.bf16 %v1561_v56, %v1559_v32  ;;  %v1522_v43 = vmul.f32 0.2, %v1471_v25  ;;  %v1352_v22 = vadd.f32 %v2509_v41, %v2456_v59  ;;  %v1523_v58 = vmul.f32 0.2, %v1475_v49 }
 0x1fc   : > { %v1566_v21 = vmax.f32 %v1501_v5, %v1534_v16  ;;  %v1582_v40 = vpack.c.bf16 %v1565_v19, %v1563_v27  ;;  %v1525_v57 = vmul.f32 0.2, %v1479_v26  ;;  %v1579_v63 = vpack.c.bf16 %v1558_v28, %v1556_v39 }
 0x1fd   : > { %v1520_v62 = vmul.f32 0.2, %v1467_v34  ;;  %v1469_v45 = vadd.f32 %v2519_v47, %v1356_v50  ;;  %v1554_v11 = vmax.f32 %v1471_v25, %v1522_v43  ;;  %v1555_v53 = vmax.f32 %v1475_v49, %v1523_v58 }
 0x1fe   : > { %v1583_v30 = vpack.c.bf16 %v1566_v21, %v1564_v8  ;;  %v1557_v46 = vmax.f32 %v1479_v26, %v1525_v57  ;;  %v1457_v12 = vadd.f32 %v2498_v51, %v1344_v61  ;;  %v2592_v51 = vrot.slane %v2466_v7, %v2473_v15 }
 0x1ff   : > { %v1552_v13 = vmax.f32 %v1467_v34, %v1520_v62  ;;  %v1521_v59 = vmul.f32 0.2, %v1469_v45 }
 0x200   : > { %1619 = vmatprep.subr.bf16.mxu0 %v1583_v30  ;;  %v1578_v41 = vpack.c.bf16 %v1557_v46, %v1555_v53 }
 0x201   : > { %1620 = vmatpush1.bf16.xpose.msra.mxu0 %v1582_v40  ;;  %v1577_v16 = vpack.c.bf16 %v1554_v11, %v1552_v13  ;;  %v1553_v24 = vmax.f32 %v1469_v45, %v1521_v59 }
 0x202   : > { %1621 = vmatprep.subr.bf16.mxu0 %v1581_v52  ;;  %v1348_v52 = vadd.f32 %v2503_v35, %v2460_v60  ;;  %v1465_v35 = vadd.f32 %v2511_v42, %v1352_v22  ;;  %v1516_v60 = vmul.f32 0.2, %v1457_v12 }
 0x204   : > { %v1461_v5 = vadd.f32 %v2505_v36, %v1348_v52  ;;  %v1519_v6 = vmul.f32 0.2, %v1465_v35  ;;  %v1548_v36 = vmax.f32 %v1457_v12, %v1516_v60 }
 0x206   : > { %v1518_v14 = vmul.f32 0.2, %v1461_v5  ;;  %v1551_v19 = vmax.f32 %v1465_v35, %v1519_v6 }
 0x208   : > { %v1550_v47 = vmax.f32 %v1461_v5, %v1518_v14  ;;  %v1576_v20 = vpack.c.bf16 %v1553_v24, %v1551_v19 }
 0x209   : > { %1622 = vmatpush1.bf16.xpose.msra.mxu0 %v1580_v37 }
 0x20a   : > { %1623 = vmatprep.subr.bf16.mxu0 %v1579_v63  ;;  %v1575_v42 = vpack.c.bf16 %v1550_v47, %v1548_v36 }
 0x211   : > { %1624 = vmatpush1.bf16.xpose.msra.mxu0 %v1578_v41 }
 0x212   : > { %1625 = vmatprep.subr.bf16.mxu0 %v1577_v16 }
 0x219   : > { %1626 = vmatpush1.bf16.xpose.msra.mxu0 %v1576_v20 }
 0x21a   : > { %1627 = vmatprep.subr.bf16.mxu0 %v1575_v42 }
 0x221   : > { %1628 = vmatpush1.bf16.xpose.msra.mxu0 %v2521_v48  ;;  %v2593_v48 = vld [vmem:[#allocation3_spill] sm:$0xff] }
 0x222   : > { %1629 = vmatprep.subr.bf16.mxu0 %v2507_v3  ;;  %v1593_v8 = vrot.slane %v1588_v18, %v2593_v48 }
 0x229   : > { %1630 = vmatpush1.bf16.xpose.msra.mxu0 %v2500_v31 }
 0x22a   : > { %1631 = vmatprep.subr.bf16.mxu0 %v2493_v17 }
 0x231   : > { %1632 = vmatpush1.bf16.xpose.msra.mxu0 %v2490_v10 }
 0x232   : > { %1633 = vmatprep.subr.bf16.mxu0 %v2485_v44 }
 0x239   : > { %1634 = vmatpush1.bf16.xpose.msra.mxu0 %v2481_v38 }
 0x240   : > { %1652 = vmatmul.mubr.bf16.vlgmr.msra.gmra.mxu0 %v2592_v51 }
 0x300   : > { %v1653_v17 = vpop.f32.mrf.mxu0 }
 0x301   : > { %v1654_v31 = vadd.f32 %v1653_v17, %v1593_v8 }
 0x302   : > { %v1655_v10 = vpop.f32.mrf.mxu0 }
 0x303   : > { %1659 = vst [vmem:[%s278_s22] sm:$0x1] %v1654_v31 }
 0x304   : > { %v1656_v44 = vpop.f32.mrf.mxu0 }
 0x306   : > { %v1657_v3 = vpop.f32.mrf.mxu0 }
 0x307 PF: > { %s19_s26 = sadd.s32 1, %s1970_s26  }
 0x308   : > { %p16_p5 = scmp.ge.s32.totalorder %s19_s26, 5  }
 0x30a   :  { %18 = sbr.rel (!%p16_p5) target bundleno = 3 (0x3), region = 78 }

</bundles_post_ra>
